<compile_context>
chip_gen: v7x
topology: tpu7x:2x2x1
jax: 0.10.0
libtpu: 0.0.40
codegen_flags: <defaults>
</compile_context>

<pallas_src>
import functools

import jax
import jax.numpy as jnp
from jax import lax
from jax.experimental import pallas as pl
from jax.experimental.pallas import tpu as pltpu


def _round_up(x, m):
    return ((x + m - 1) // m) * m


def _query_phys_vmem_bytes():
    try:
        info = pltpu.get_tpu_info()
        v = getattr(info, "vmem_capacity_bytes", None)
        if v:
            return int(v)
    except Exception:
        pass
    return 64 * 1024 * 1024                      # conservative default (v7x)


_PHYS_VMEM_BYTES = _query_phys_vmem_bytes()
# ~48 MiB scoped limit on v7x (64 MiB physical), ~96 MiB on v5e/v6e (128 MiB).
_VMEM_LIMIT_BYTES = max(min(_PHYS_VMEM_BYTES * 3 // 4, 100 * 1024 * 1024),
                        32 * 1024 * 1024)
_VMEM_BUDGET_BYTES = _VMEM_LIMIT_BYTES - 8 * 1024 * 1024


# --------------------------------------------------------------------------- #
# Kernels
# --------------------------------------------------------------------------- #
def _resident_kernel(x_ref, q_ref, sim_ref, idx_ref, *, valid_cols):
    """Fast path: 1-D grid over row blocks, whole (D, S) queue resident."""
    x = x_ref[...].astype(jnp.float32)
    inv = lax.rsqrt(jnp.maximum(jnp.sum(x * x, axis=-1, keepdims=True), 1e-24))
    xn = (x * inv).astype(q_ref.dtype)
    sim = lax.dot_general(xn, q_ref[...],
                          dimension_numbers=(((1,), (0,)), ((), ())),
                          preferred_element_type=jnp.float32)       # (rt, S_pad)
    n_cols = sim.shape[1]
    col = lax.broadcasted_iota(jnp.int32, sim.shape, 1)
    if valid_cols < n_cols:               # static: only when the queue is padded
        sim = jnp.where(col < valid_cols, sim, -jnp.inf)
    local_max = jnp.max(sim, axis=-1, keepdims=True)
    local_arg = jnp.min(jnp.where(sim == local_max, col, n_cols),
                        axis=-1, keepdims=True).astype(jnp.int32)
    sim_ref[...] = local_max
    idx_ref[...] = local_arg


def _stream_kernel(x_ref, q_ref, sim_ref, idx_ref, xn_scr, max_scr, arg_scr,
                   *, valid_cols, total_cols):
    """Grid: (row blocks [parallel], queue tiles [arbitrary reduction])."""
    s = pl.program_id(1)
    last = pl.num_programs(1) - 1
    qt = q_ref.shape[1]

    @pl.when(s == 0)
    def _():
        # Hoisted once-per-row-block work: normalize x (F.normalize semantics,
        # rsqrt -> EUP slot), reset running max/argmax.
        x = x_ref[...].astype(jnp.float32)
        inv = lax.rsqrt(jnp.maximum(jnp.sum(x * x, axis=-1, keepdims=True),
                                    1e-24))
        xn_scr[...] = (x * inv).astype(xn_scr.dtype)
        max_scr[...] = jnp.full(max_scr.shape, -jnp.inf, dtype=max_scr.dtype)
        arg_scr[...] = jnp.zeros(arg_scr.shape, dtype=arg_scr.dtype)

    # K-major queue tile (D, qt): natural (M,K)x(K,N) MXU form, f32 accumulate.
    sim = lax.dot_general(xn_scr[...], q_ref[...],
                          dimension_numbers=(((1,), (0,)), ((), ())),
                          preferred_element_type=jnp.float32)       # (rt, qt)

    def _update(sim_t):
        col = lax.broadcasted_iota(jnp.int32, sim_t.shape, 1)
        local_max = jnp.max(sim_t, axis=-1, keepdims=True)
        local_arg = (jnp.min(jnp.where(sim_t == local_max, col, qt),
                             axis=-1, keepdims=True).astype(jnp.int32) + s * qt)
        # strict '>' across tiles keeps global first-occurrence argmax semantics
        better = local_max > max_scr[...]
        arg_scr[...] = jnp.where(better, local_arg, arg_scr[...])
        max_scr[...] = jnp.where(better, local_max, max_scr[...])

    if valid_cols < total_cols:
        # Padding can only live in the final queue tile -> mask only there.
        @pl.when(s == last)
        def _():
            gcol = lax.broadcasted_iota(jnp.int32, sim.shape, 1) + s * qt
            _update(jnp.where(gcol < valid_cols, sim, -jnp.inf))

        @pl.when(s != last)
        def _():
            _update(sim)
    else:
        _update(sim)

    @pl.when(s == last)
    def _():
        sim_ref[...] = max_scr[...]
        idx_ref[...] = arg_scr[...]


# --------------------------------------------------------------------------- #
# Tiling / wrapper
# --------------------------------------------------------------------------- #
def _pick_tiles(B, S_pad, D, c_itemsize, queue_tile, row_tile, force_stream):
    budget = _VMEM_BUDGET_BYTES
    rt = min(_round_up(row_tile, 8), _round_up(B, 8))
    # v7x has two TensorCores: make sure the "parallel" row axis has >= 2 blocks
    # when the batch is large enough to split usefully.
    if B > 256:
        while rt > 128 and _round_up(B, rt) // rt < 2:
            rt = max(128, _round_up(rt // 2, 8))

    def est(rt_, qt_, resident):
        q_bufs = 1 if resident else 2
        return (q_bufs * qt_ * D * c_itemsize     # queue block(s)
                + 2 * rt_ * D * 4                 # resident x block (f32, 2 bufs)
                + rt_ * D * c_itemsize            # normalized-x scratch
                + 2 * rt_ * qt_ * 4               # sim tile + epilogue headroom
                + 64 * rt_)                       # max/arg scratch + outputs

    if not force_stream and est(rt, S_pad, True) <= budget:
        return rt, S_pad, True                    # fast path: queue fully resident

    while rt > 64 and est(rt, 128, False) > budget:
        rt = max(64, _round_up(rt // 2, 8))

    # Largest queue tile that is a lane-multiple divisor of S_pad, <= queue_tile
    # cap, and fits the budget (avoids any per-forward queue padding).
    qt_cap = min(_round_up(queue_tile, 128), S_pad)
    qt = 128
    for steps in range(1, S_pad // 128 + 1):
        if S_pad % steps:
            continue
        cand = S_pad // steps
        if cand % 128 or cand > qt_cap:
            continue
        if est(rt, cand, False) <= budget:
            qt = cand
            break
    return rt, qt, False


@functools.partial(
    jax.jit,
    static_argnames=("valid_cols", "queue_tile", "row_tile", "compute_dtype",
                     "force_stream"))
def _nn_similarity_argmax(x, qn_t, *, valid_cols, queue_tile=2048, row_tile=512,
                          compute_dtype=jnp.bfloat16, force_stream=False):
    """Max cosine similarity + argmax queue index for every row of x.

    x:    (B, D) raw (un-normalized) features.
    qn_t: (D, S_pad) L2-normalized, compute-dtype, K-major queue candidates
          (padded along S to a multiple of 128; valid_cols are real).
    """
    B, D = x.shape
    D2, S_pad = qn_t.shape
    assert D == D2 and valid_cols <= S_pad

    c_itemsize = jnp.dtype(compute_dtype).itemsize
    rt, qt, resident = _pick_tiles(B, S_pad, D, c_itemsize, queue_tile,
                                   row_tile, force_stream)
    B_pad = _round_up(B, rt)
    if B_pad != B:
        x = jnp.pad(x, ((0, B_pad - B), (0, 0)))

    out_shape = (jax.ShapeDtypeStruct((B_pad, 1), jnp.float32),
                 jax.ShapeDtypeStruct((B_pad, 1), jnp.int32))
    params = pltpu.CompilerParams(
        dimension_semantics=(("parallel",) if resident
                             else ("parallel", "arbitrary")),
        vmem_limit_bytes=_VMEM_LIMIT_BYTES)

    if resident:
        kernel = functools.partial(_resident_kernel, valid_cols=valid_cols)
        sim, qidx = pl.pallas_call(
            kernel,
            out_shape=out_shape,
            grid_spec=pltpu.PrefetchScalarGridSpec(
                num_scalar_prefetch=0,
                grid=(B_pad // rt,),
                in_specs=[
                    pl.BlockSpec((rt, D), lambda i: (i, 0)),     # x row block
                    pl.BlockSpec((D, S_pad), lambda i: (0, 0)),  # resident queue
                ],
                out_specs=[
                    pl.BlockSpec((rt, 1), lambda i: (i, 0)),
                    pl.BlockSpec((rt, 1), lambda i: (i, 0)),
                ],
            ),
            compiler_params=params,
        )(x, qn_t)
    else:
        kernel = functools.partial(_stream_kernel, valid_cols=valid_cols,
                                   total_cols=S_pad)
        sim, qidx = pl.pallas_call(
            kernel,
            out_shape=out_shape,
            grid_spec=pltpu.PrefetchScalarGridSpec(
                num_scalar_prefetch=0,
                grid=(B_pad // rt, S_pad // qt),
                in_specs=[
                    pl.BlockSpec((rt, D), lambda i, s: (i, 0)),  # resident x rows
                    pl.BlockSpec((D, qt), lambda i, s: (0, s)),  # streamed queue
                ],
                out_specs=[
                    pl.BlockSpec((rt, 1), lambda i, s: (i, 0)),
                    pl.BlockSpec((rt, 1), lambda i, s: (i, 0)),
                ],
                scratch_shapes=[
                    pltpu.VMEM((rt, D), compute_dtype),   # hoisted normalized x
                    pltpu.VMEM((rt, 1), jnp.float32),     # running max
                    pltpu.VMEM((rt, 1), jnp.int32),       # running argmax
                ],
            ),
            compiler_params=params,
        )(x, qn_t)
    return sim[:B, 0], qidx[:B, 0]


def prepare_candidates(queue_x, *, compute_dtype=jnp.bfloat16):
    """Once per queue update: view-0 slice, L2-normalize, cast, K-major transpose,
    pad S to a lane multiple.  Keeps all of this out of the per-forward hot path.
    Returns (raw_candidates (S,D), normalized K-major candidates (D,S_pad), S)."""
    q0 = queue_x[:, 0, :]                                          # (S, D)
    q0f = q0.astype(jnp.float32)
    norm = jnp.maximum(jnp.linalg.norm(q0f, axis=-1, keepdims=True), 1e-12)
    qn_t = jnp.transpose((q0f / norm).astype(compute_dtype))       # (D, S)
    S = qn_t.shape[1]
    S_pad = _round_up(S, 128)
    if S_pad != S:
        qn_t = jnp.pad(qn_t, ((0, 0), (0, S_pad - S)))
    return q0, qn_t, S


def nnclr_vote_queue_forward(x, idx, queue_x, queue_age, *, swap_topk=1,
                             reduction="mean", queue_tile=2048, row_tile=512,
                             compute_dtype=jnp.bfloat16, prepared=None,
                             force_stream=False):
    """Eval-mode NnclrVoteQueue.forward (voting_topk=None, candidates='view0')."""
    assert x.ndim == 2
    batch_size = idx.shape[0]
    assert x.shape[0] % batch_size == 0
    assert swap_topk == 1  # TODO(synk): random choice among top-k for swap_topk > 1
    # TODO(synk): voting_topk ranking branch + training-mode ring-buffer update
    #             (buffer mutation + all_gather) are not ported.

    if prepared is None:
        prepared = prepare_candidates(queue_x, compute_dtype=compute_dtype)
    candidates, qn_t, valid_cols = prepared

    _, nn_qidx = _nn_similarity_argmax(
        x, qn_t, valid_cols=valid_cols, queue_tile=queue_tile,
        row_tile=row_tile, compute_dtype=compute_dtype,
        force_stream=force_stream)

    nn_x = jnp.take(candidates, nn_qidx, axis=0)       # gather glue (plain JAX)
    nn_age = jnp.take(queue_age, nn_qidx, axis=0)

    # Metric recomputed in f32 on the selected pair (F.cosine_similarity
    # semantics; exact regardless of the kernel compute dtype).
    xf = x.astype(jnp.float32)
    nf = nn_x.astype(jnp.float32)
    num = jnp.sum(xf * nf, axis=-1)
    den = jnp.maximum(jnp.linalg.norm(xf, axis=-1) *
                      jnp.linalg.norm(nf, axis=-1), 1e-12)
    nn_sim = num / den

    def _reduce(v):
        v = v.astype(jnp.float32)
        return jnp.mean(v) if reduction == "mean" else v

    metrics = {"nn-similarity": _reduce(nn_sim), "nn-age": _reduce(nn_age)}
    return nn_x, metrics


# --------------------------------------------------------------------------- #
# Self-test
# --------------------------------------------------------------------------- #
if __name__ == "__main__":
    key = jax.random.PRNGKey(0)
    dim, num_queues = 32, 2
    batch_size, num_views = 4, 2

    def reference(x, queue_x):
        xn = x / jnp.maximum(jnp.linalg.norm(x, axis=-1, keepdims=True), 1e-12)
        q0 = queue_x[:, 0, :]
        qn = q0 / jnp.maximum(jnp.linalg.norm(q0, axis=-1, keepdims=True), 1e-12)
        s = xn @ qn.T
        am = jnp.argmax(s, axis=-1)
        return q0[am], jnp.max(s, axis=-1)

    k1, k2, k3, k4 = jax.random.split(key, 4)
    x = jax.random.normal(k2, (num_views * batch_size, dim), dtype=jnp.float32)
    idx = jax.random.randint(k3, (batch_size,), 0, 1000, dtype=jnp.int32)

    # --- case 1: lane-aligned queue -> resident fast path, exact f32 check
    size = 256
    queue_x = jax.random.normal(k1, (size, num_queues, dim), dtype=jnp.float32)
    queue_age = jnp.zeros((size,), dtype=jnp.int32)
    ref_nn_x, ref_max = reference(x, queue_x)

    nn_x32, m32 = nnclr_vote_queue_forward(x, idx, queue_x, queue_age,
                                           compute_dtype=jnp.float32)
    jax.block_until_ready((nn_x32, m32))
    assert jnp.allclose(nn_x32, ref_nn_x, atol=1e-5)
    assert jnp.allclose(m32["nn-similarity"], jnp.mean(ref_max), atol=1e-5)

    # --- case 2: ragged queue (200 -> padded to 256), forced streaming with
    #             128-wide queue tiles (exercises last-tile masking), exact f32
    size2 = 200
    queue_x2 = jax.random.normal(k4, (size2, num_queues, dim), dtype=jnp.float32)
    queue_age2 = jnp.zeros((size2,), dtype=jnp.int32)
    ref_nn_x2, ref_max2 = reference(x, queue_x2)

    nn_x2, m2 = nnclr_vote_queue_forward(x, idx, queue_x2, queue_age2,
                                         compute_dtype=jnp.float32,
                                         queue_tile=128, force_stream=True)
    jax.block_until_ready((nn_x2, m2))
    assert jnp.allclose(nn_x2, ref_nn_x2, atol=1e-5)
    assert jnp.allclose(m2["nn-similarity"], jnp.mean(ref_max2), atol=1e-5)

    # --- case 3: production path (bf16 operands, prepared candidates reused).
    #             Near-tie argmax flips are possible -> check achieved cosine.
    prepared = prepare_candidates(queue_x, compute_dtype=jnp.bfloat16)
    nn_x16, m16 = nnclr_vote_queue_forward(x, idx, queue_x, queue_age,
                                           compute_dtype=jnp.bfloat16,
                                           prepared=prepared)
    jax.block_until_ready((nn_x16, m16))
    xn = x / jnp.maximum(jnp.linalg.norm(x, axis=-1, keepdims=True), 1e-12)
    n16 = nn_x16 / jnp.maximum(jnp.linalg.norm(nn_x16, axis=-1, keepdims=True),
                               1e-12)
    achieved = jnp.sum(xn * n16, axis=-1)
    assert bool(jnp.all(achieved >= ref_max - 2e-2))
    assert jnp.allclose(m16["nn-similarity"], jnp.mean(ref_max), atol=2e-2)

    print("KERNEL_OK")
</pallas_src>

<mosaic_0001>
module attributes {stable_mosaic.version = 11 : i64} {
  func.func @_resident_kernel(%arg0: i32, %arg1: memref<8x32xf32, #tpu.memory_space<vmem>>, %arg2: memref<32x256xf32, #tpu.memory_space<vmem>>, %arg3: memref<8x1xf32, #tpu.memory_space<vmem>>, %arg4: memref<8x1xi32, #tpu.memory_space<vmem>>) attributes {dimension_semantics = [#tpu.dimension_semantics<parallel>], iteration_bounds = array<i64: 1>, scalar_prefetch = 0 : i64, scratch_operands = 0 : i64, tpu.core_type = #tpu.core_type<tc>, window_params = [{transform_indices = @transform_0, window_bounds = array<i64: 8, 32>}, {pipeline_mode = #tpu.pipeline_mode<synchronous>, transform_indices = @transform_1, window_bounds = array<i64: 32, 256>}, {transform_indices = @transform_2, window_bounds = array<i64: 8, 1>}, {transform_indices = @transform_3, window_bounds = array<i64: 8, 1>}]} {
    %c0 = arith.constant 0 : index
    %c0_0 = arith.constant 0 : index
    %0 = vector.load %arg1[%c0, %c0_0] : memref<8x32xf32, #tpu.memory_space<vmem>>, vector<8x32xf32>
    %1 = arith.mulf %0, %0 : vector<8x32xf32>
    %cst = arith.constant dense<0.000000e+00> : vector<8xf32>
    %2 = vector.multi_reduction <add>, %1, %cst [1] : vector<8x32xf32> to vector<8xf32>
    %3 = vector.shape_cast %2 : vector<8xf32> to vector<8x1xf32>
    %cst_1 = arith.constant 1.000000e-24 : f32
    %4 = vector.broadcast %cst_1 : f32 to vector<8x1xf32>
    %5 = arith.maximumf %3, %4 : vector<8x1xf32>
    %6 = math.rsqrt %5 : vector<8x1xf32>
    %7 = vector.broadcast %6 : vector<8x1xf32> to vector<8x32xf32>
    %8 = arith.mulf %0, %7 : vector<8x32xf32>
    %c0_2 = arith.constant 0 : index
    %c0_3 = arith.constant 0 : index
    %9 = vector.load %arg2[%c0_2, %c0_3] : memref<32x256xf32, #tpu.memory_space<vmem>>, vector<32x256xf32>
    %cst_4 = arith.constant dense<0.000000e+00> : vector<8x256xf32>
    %10 = tpu.matmul %8, %9, %cst_4 {dimension_numbers = #tpu.dot_dimension_numbers<[1], [0], [0], [1], [0, 0, 1, 1], [], []>} : vector<8x32xf32>, vector<32x256xf32>, vector<8x256xf32> -> vector<8x256xf32>
    %11 = tpu.iota {dimensions = array<i32: 1>} : vector<8x256xi32>
    %cst_5 = arith.constant dense<0xFF800000> : vector<8xf32>
    %12 = vector.multi_reduction <maximumf>, %10, %cst_5 [1] : vector<8x256xf32> to vector<8xf32>
    %13 = vector.shape_cast %12 : vector<8xf32> to vector<8x1xf32>
    %14 = vector.broadcast %13 : vector<8x1xf32> to vector<8x256xf32>
    %15 = arith.cmpf oeq, %10, %14 : vector<8x256xf32>
    %c256_i32 = arith.constant 256 : i32
    %16 = vector.broadcast %c256_i32 : i32 to vector<8x256xi32>
    %17 = arith.select %15, %11, %16 : vector<8x256xi1>, vector<8x256xi32>
    %cst_6 = arith.constant dense<2147483647> : vector<8xi32>
    %18 = vector.multi_reduction <minsi>, %17, %cst_6 [1] : vector<8x256xi32> to vector<8xi32>
    %19 = vector.shape_cast %18 : vector<8xi32> to vector<8x1xi32>
    %c0_7 = arith.constant 0 : index
    %c0_8 = arith.constant 0 : index
    %20 = vector.load %arg3[%c0_7, %c0_8] : memref<8x1xf32, #tpu.memory_space<vmem>>, vector<8x1xf32>
    tpu.vector_store %arg3[%c0_7, %c0_8], %13 {strides = array<i32>} : memref<8x1xf32, #tpu.memory_space<vmem>>, vector<8x1xf32>,
    %c0_9 = arith.constant 0 : index
    %c0_10 = arith.constant 0 : index
    %21 = vector.load %arg4[%c0_9, %c0_10] : memref<8x1xi32, #tpu.memory_space<vmem>>, vector<8x1xi32>
    tpu.vector_store %arg4[%c0_9, %c0_10], %19 {strides = array<i32>} : memref<8x1xi32, #tpu.memory_space<vmem>>, vector<8x1xi32>,
    return
  }
  func.func @transform_0(%arg0: i32) -> (i32, i32) {
    %c0_i32 = arith.constant 0 : i32
    %c0_i32_0 = arith.constant 0 : i32
    return %arg0, %c0_i32 : i32, i32
  }
  func.func @transform_1(%arg0: i32) -> (i32, i32) {
    %c0_i32 = arith.constant 0 : i32
    %c0_i32_0 = arith.constant 0 : i32
    %c0_i32_1 = arith.constant 0 : i32
    return %c0_i32, %c0_i32_0 : i32, i32
  }
  func.func @transform_2(%arg0: i32) -> (i32, i32) {
    %c0_i32 = arith.constant 0 : i32
    %c0_i32_0 = arith.constant 0 : i32
    return %arg0, %c0_i32 : i32, i32
  }
  func.func @transform_3(%arg0: i32) -> (i32, i32) {
    %c0_i32 = arith.constant 0 : i32
    %c0_i32_0 = arith.constant 0 : i32
    return %arg0, %c0_i32 : i32, i32
  }
}

</mosaic_0001>

<bundles_post_ra>
// kernel: _nn_similarity_argmax.1
= control target key start
LH: loop header
LB: loop body
LE: loop exit
PB: predicated region body
PF: predicated region fallthrough
CT: control target
= control target key end

     0   :  { %9 = vsyncpa [#allocation3], 0  ;;  %s299_s0 = inlined_call_operand.hbm [shape: f32[8,32], index: 0, kind: input, shape index: {}]   ;;  %s300_s1 = inlined_call_operand.hbm [shape: f32[32,256], index: 1, kind: input, shape index: {}]   ;;  %s301_s2 = inlined_call_operand.vmem [shape: f32[8,1], index: 2, kind: output, shape index: {0}]   ;;  %s302_s3 = inlined_call_operand.vmem [shape: s32[8,1], index: 3, kind: output, shape index: {1}]  }
   0x1   :  { %10 = vsyncpa [#allocation5], 0  ;;  %s233_s12 = smov [#allocation2]   ;;  %s234_s14 = smov [#allocation4]  }
   0x2   :  { %s17_s13 = sshll.u32 %s233_s12, 4  ;;  %s26_s15 = sshll.u32 %s234_s14, 4  ;;  %s18_s13 = int_to_ptr.vmem [resolvable:$true] %s17_s13  ;;  %s258_s15 = int_to_ptr.vmem [resolvable:$true] %s26_s15 }
   0x3   :  { %s185_s18 = scalar_lea.hbm %s299_s0, 128 }
   0x4   :  { %p186_p0 = scmp.ne.s32.totalorder %s299_s0, %s185_s18  ;;  %p189_p1 = scmp.lt.u32.totalorder %s185_s18, %s299_s0 }
   0x6   :  { %p191_p2 = pnand %p189_p1, %p186_p0 }
   0x8   :  { %194 = shalt.err (!%p191_p2)
}
   0x9   :  { %s195_s23 = scalar_lea.vmem %s18_s13, 128  ;;  %p200_p4 = scmp.lt.s32.totalorder %s18_s13, %s18_s13 }
   0xa   :  { %p196_p3 = scmp.ne.s32.totalorder %s18_s13, %s195_s23  ;;  %p201_p5 = scmp.lt.s32.totalorder %s195_s23, %s195_s23 }
   0xc   :  { %p202_p6 = por %p201_p5, %p200_p4 }
   0xe   :  { %p203_p7 = pnand %p202_p6, %p196_p3 }
  0x10   :  { %206 = shalt.err (!%p203_p7)
}
  0x11   :  { %20 = dma.hbm_to_vmem [thread:$0]  %s299_s0, 128, %s18_s13, [#allocation3]  }
  0x12   :  { %s207_s28 = scalar_lea.hbm %s300_s1, 1024 }
  0x13   :  { %p208_p8 = scmp.ne.s32.totalorder %s300_s1, %s207_s28  ;;  %p211_p9 = scmp.lt.u32.totalorder %s207_s28, %s300_s1 }
  0x15   :  { %p213_p10 = pnand %p211_p9, %p208_p8 }
  0x17   :  { %216 = shalt.err (!%p213_p10)
}
  0x18   :  { %s217_s6 = scalar_lea.vmem %s258_s15, 1024  ;;  %p222_p12 = scmp.lt.s32.totalorder %s258_s15, %s258_s15 }
  0x19   :  { %p218_p11 = scmp.ne.s32.totalorder %s258_s15, %s217_s6  ;;  %p223_p13 = scmp.lt.s32.totalorder %s217_s6, %s217_s6 }
  0x1b   :  { %p224_p0 = por %p223_p13, %p222_p12 }
  0x1d   :  { %p225_p1 = pnand %p224_p0, %p218_p11 }
  0x1f   :  { %228 = shalt.err (!%p225_p1)
}
  0x20   :  { %s235_s0 = smov 256   ;;  %s236_s7 = smov 16  }
  0x21   :  { %32 = dma.hbm_to_vmem [thread:$0]  %s300_s1, 1024, %s258_s15, [#allocation5], %s235_s0, %s235_s0, %s236_s7  }
  0x22   :  { %229 = dma.done.wait [#allocation3], 128  }
  0x23   :  { %230 = vsyncadd [#allocation3], 4294967168 }
  0x24   :  { %231 = dma.done.wait [#allocation5], 1024  }
  0x25   :  { %232 = vsyncadd [#allocation5], 4294966272  ;;  %v39_v0 = vld [vmem:[#allocation2] sm:$0xff]  ;;  %vm41_vm0 = vcmask 261120   ;;  %v49_v3 = vld [vmem:[#allocation4 + $0x8] sm:$0xff]  ;;  %v237_v10 = vmov 0.0   ;;  %v130_v23 = vlaneseq }
  0x26   :  { %v40_v1 = vmul.f32 %v39_v0, %v39_v0  ;;  %v51_v4 = vld [vmem:[#allocation4 + $0x18] sm:$0xff]  ;;  %v48_v5 = vld [vmem:[#allocation4] sm:$0xff]  ;;  %v50_v7 = vld [vmem:[#allocation4 + $0x10] sm:$0xff]  ;;  %123 = vmatprep.mubr.f32.mxu0 %v237_v10  ;;  %vm156_vm1 = vcmask 7168  }
  0x27   :  { %v170_v6 = vpack.c.bf16 %v51_v4, %v49_v3  ;;  %v53_v8 = vld [vmem:[#allocation4 + $0x28] sm:$0xff]  ;;  %v55_v9 = vld [vmem:[#allocation4 + $0x38] sm:$0xff]  ;;  %v172_v11 = vpack.c.bf16 %v50_v7, %v48_v5  ;;  %v52_v13 = vld [vmem:[#allocation4 + $0x20] sm:$0xff]  ;;  %v131_v24 = vand.u32 127, %v130_v23 }
  0x28   :  { %v42_v2 = vsel %vm41_vm0, %v40_v1, 0.0  ;;  %v174_v12 = vpack.c.bf16 %v55_v9, %v53_v8  ;;  %v54_v14 = vld [vmem:[#allocation4 + $0x30] sm:$0xff] }
  0x29   :  { %43 = vadd.xlane.f32.xlu0 %v42_v2  ;;  %171 = vmatprep.subr.bf16.mxu0 %v170_v6  ;;  %v176_v15 = vpack.c.bf16 %v54_v14, %v52_v13  ;;  %v132_v25 = vadd.s32 128, %v131_v24 }
  0x2a   :  { %173 = vmatpush1.bf16.msra.mxu0 %v172_v11 }
  0x2b   :  { %175 = vmatprep.subr.bf16.mxu0 %v174_v12 }
  0x2e   :  { %177 = vmatpush1.bf16.msra.mxu0 %v176_v15 }
  0xb6   :  { %v44_v16 = vpop.xlane.xlu0 %43 }
  0xb7   :  { %v45_v17 = vmax.f32 %v44_v16, 1e-24 }
  0xb9   :  { %183 = vrsqrt.f32 %v45_v17 }
  0xc3   :  { %v184_v18 = vpop.eup %183 }
  0xc4   :  { %v47_v19 = vmul.f32 %v184_v18, %v39_v0 }
  0xc6   :  { %169 = vmatmul.mubr.msk.f32.vlgmr.msra.gmra.mrb[0].mxu0 %vm41_vm0, %v47_v19 }
 0x199   :  { %v125_v20 = vpop.f32.mrb[0].mxu0 }
 0x19a   :  { %v127_v21 = vpop.f32.mrb[1].mxu0 }
 0x19b   :  { %v133_v22 = vmax.f32 %v125_v20, %v127_v21 }
 0x19d   :  { %134 = vmax.xlane.f32.xlu0 %v133_v22 }
 0x22a   :  { %v135_v26 = vpop.xlane.xlu0 %134 }
 0x22b   :  { %vm136_vm2 = vcmp.eq.f32.partialorder %v125_v20, %v135_v26  ;;  %vm137_vm3 = vcmp.eq.f32.partialorder %v127_v21, %v135_v26  ;;  %157 = vst.msk [vmem:[%s301_s2] sm:$0xff] %vm156_vm1, %v135_v26 }
 0x22c   :  { %v138_v27 = vsel %vm136_vm2, %v131_v24, 256  ;;  %v139_v28 = vsel %vm137_vm3, %v132_v25, 256 }
 0x22d   :  { %vm140_vm4 = vcmp.lt.s32.totalorder %v138_v27, %v139_v28 }
 0x22e   :  { %v141_v29 = vsel %vm140_vm4, %v138_v27, %v139_v28 }
 0x22f   :  { %v143_v30 = vshra.s32 %v141_v29, 16  ;;  %v142_v32 = vand.u32 65535, %v141_v29 }
 0x231   :  { %v145_v31 = vcvt.s32.f32 %v143_v30  ;;  %v144_v34 = vcvt.s32.f32 %v142_v32 }
 0x233   :  { %146 = vmin.xlane.f32.xlu1 %v145_v31 }
 0x2c0   :  { %v147_v33 = vpop.xlane.xlu1 %146 }
 0x2c1   :  { %vm148_vm5 = vcmp.eq.f32.partialorder %v145_v31, %v147_v33  ;;  %v153_v36 = vcvt.f32.s32 %v147_v33 }
 0x2c2   :  { %v149_v35 = vsel %vm148_vm5, %v144_v34, inf }
 0x2c3   :  { %150 = vmin.xlane.f32.xlu1 %v149_v35  ;;  %v154_v38 = vshll.u32 %v153_v36, 16 }
 0x350   :  { %v151_v37 = vpop.xlane.xlu1 %150 }
 0x351   :  { %v152_v39 = vcvt.f32.s32 %v151_v37 }
 0x353   :  { %v155_v40 = vadd.s32 %v154_v38, %v152_v39 }
 0x355   :  { %158 = vst.msk [vmem:[%s302_s3] sm:$0xff] %vm156_vm1, %v155_v40 }
 0x356   :  { %167 = vsyncpa [#allocation3], 1 }
 0x357   :  { %168 = vsyncpa [#allocation5], 1 }

</bundles_post_ra>
